<compile_context>
chip_gen: v6e
topology: v6e:2x2x1
jax: 0.10.0
libtpu: 0.0.40
codegen_flags: <defaults>
</compile_context>

<pallas_src>
import jax
import jax.numpy as jnp
from jax.experimental import pallas as pl
from jax.experimental.pallas import tpu as pltpu

BN_EPS = 1e-5
LANE = 128


def _round_up(x, m):
    return (x + m - 1) // m * m


def _mxu_round(d):
    # 256-alignment fills the 2x256x256 MXU on v6e/v7x when the logical dim is
    # large; dims <= 128 stay at the 128-lane minimum (also optimal on v5e's
    # 128x128 MXUs, where the extra padding for >128 dims is harmless).
    return _round_up(d, 256) if d > 128 else LANE


def _pad2(a, rows, cols, val=0.0):
    return jnp.pad(a, ((0, rows - a.shape[0]), (0, cols - a.shape[1])),
                   constant_values=val)


def _vmem_budget_bytes():
    # Generation-aware scoped-VMEM budget: ~90 MiB on v5e/v6e (128 MiB physical),
    # ~45 MiB on v7x (64 MiB physical, shared by both cores' pipelines).
    try:
        cap = int(pltpu.get_tpu_info().vmem_capacity_bytes)
    except Exception:  # no info available -> conservative v5e/v6e default
        cap = 128 * 1024 * 1024
    return min(int(cap * 0.7), 96 * 1024 * 1024)


# ---------- pass 1: encoder + linear + per-tile batch-statistic partials ----------
def _make_fwd_stats_kernel(rows_last, need_mask):
    def kernel(x_ref, we_ref, be_ref, w_ref, b_ref, z_ref, stats_ref):
        # encoder: relu(x @ We + be)   (bf16 MXU operands, f32 accumulation)
        h = jnp.dot(x_ref[...], we_ref[...], preferred_element_type=jnp.float32)
        h = jnp.maximum(h + be_ref[...], 0.0)

        # linear: h @ W + b  (keep f32 z in-register for the statistics)
        z = jnp.dot(h.astype(jnp.bfloat16), w_ref[...],
                    preferred_element_type=jnp.float32)
        z = z + b_ref[...]

        # bf16 intermediate writeback: z is written, re-read and rewritten, so
        # this directly cuts the dominant HBM stream.
        z_ref[...] = z.astype(z_ref.dtype)

        def _store_stats(zm):
            # direct sublane-slice writes; no concat temp
            stats_ref[0:1, :] = jnp.sum(zm, axis=0, keepdims=True)
            stats_ref[1:2, :] = jnp.sum(zm * zm, axis=0, keepdims=True)

        if need_mask:
            # mask batch-padding rows only on the last tile
            last = pl.program_id(0) == pl.num_programs(0) - 1

            @pl.when(jnp.logical_not(last))
            def _():
                _store_stats(z)

            @pl.when(last)
            def _():
                row = jax.lax.broadcasted_iota(jnp.int32, (z.shape[0], 1), 0)
                _store_stats(jnp.where(row < rows_last, z, 0.0))
        else:
            _store_stats(z)

    return kernel


# ---------- pass 2: BatchNorm1d (training-mode stats) + Sigmoid -------------------
def _make_bn_sigmoid_kernel(b_real):
    inv_b = 1.0 / float(b_real)

    def kernel(z_ref, stats_ref, gamma_ref, beta_ref, out_ref):
        stats = stats_ref[...]
        mean = stats[0:1, :] * inv_b
        # clamp: E[z^2]-E[z]^2 can go slightly negative from cancellation
        var = jnp.maximum(stats[1:2, :] * inv_b - mean * mean, 0.0)
        scale = gamma_ref[...] * jax.lax.rsqrt(var + BN_EPS)
        shift = beta_ref[...] - mean * scale
        y = z_ref[...].astype(jnp.float32) * scale + shift
        # exact sigmoid: EUP exp + full-precision reciprocal (pass is HBM-bound,
        # the extra Newton iterations are free under the stream)
        out_ref[...] = pl.reciprocal(1.0 + jnp.exp(-y), approx=False).astype(out_ref.dtype)

    return kernel


def encoder_sigmoid(x, we, be, w, b, gamma, beta, *, tb=512, tb2=1024):
    """sigmoid(BatchNorm1d_train(relu(x @ we + be) @ w + b)) -> f32."""
    B, f_in = x.shape
    f_hid = we.shape[1]
    f_out = w.shape[1]

    # lane/MXU-dense feature padding (no masked vst, full MXU occupancy)
    f_in_p = _mxu_round(f_in)
    f_hid_p = _mxu_round(f_hid)
    f_out_p = _mxu_round(f_out)

    budget = _vmem_budget_bytes()

    # resident (grid-persistent) pass-1 operands: bf16 weights + f32 bias rows
    resident = (f_in_p * f_hid_p + f_hid_p * f_out_p) * 2 + (f_hid_p + f_out_p) * 4
    # TODO(synk): if `resident` alone exceeds the budget (very large encoder), add an
    # inner K grid axis over f_in_p / f_hid_p instead of keeping We / W fully resident.

    def _p1_bytes(t):
        # double-buffered x (bf16 in) + z (bf16 out) tiles, plus in-flight f32 h / z
        return (2 * t * f_in_p * 2 + 2 * t * f_out_p * 2
                + t * f_hid_p * 4 + t * f_out_p * 4)

    # pass-1 batch tile: multiple of 16 sublanes (bf16 z packing), shrink to fit VMEM
    TB = _round_up(min(tb, B), 16)
    while TB > 16 and resident + _p1_bytes(TB) > int(budget * 0.8):
        TB = max(16, _round_up(TB // 2, 16))

    # pass-2 holds no weights -> larger tile; keep it a multiple of TB so the same
    # batch padding serves both passes.
    TB2_target = _round_up(min(tb2, B), 16)
    mult = max(1, TB2_target // TB)
    while mult > 1 and 2 * TB * mult * f_out_p * (2 + 4) > int(budget * 0.8):
        mult //= 2
    TB2 = TB * mult

    B_p = _round_up(B, TB2)
    n_tiles = B_p // TB
    n2 = B_p // TB2
    need_mask = B_p != B
    rows_last = B - (n_tiles - 1) * TB

    # bf16 operands for the MXU; biases / affine params stay f32 for the tail
    xp = _pad2(x, B_p, f_in_p).astype(jnp.bfloat16)
    wep = _pad2(we, f_in_p, f_hid_p).astype(jnp.bfloat16)
    bep = _pad2(be, 1, f_hid_p).astype(jnp.float32)
    wp = _pad2(w, f_hid_p, f_out_p).astype(jnp.bfloat16)
    bp = _pad2(b, 1, f_out_p).astype(jnp.float32)
    gp = _pad2(gamma, 1, f_out_p, 1.0).astype(jnp.float32)
    btp = _pad2(beta, 1, f_out_p).astype(jnp.float32)

    # ---- pass 1: z (bf16) + per-tile partial sum / sum-of-squares ---------------
    z_pad, partial_stats = pl.pallas_call(
        _make_fwd_stats_kernel(rows_last, need_mask),
        out_shape=(
            jax.ShapeDtypeStruct((B_p, f_out_p), jnp.bfloat16),
            jax.ShapeDtypeStruct((n_tiles, 2, f_out_p), jnp.float32),
        ),
        grid=(n_tiles,),
        in_specs=[
            pl.BlockSpec((TB, f_in_p), lambda i: (i, 0)),        # x: batch-tiled
            pl.BlockSpec((f_in_p, f_hid_p), lambda i: (0, 0)),   # We: resident
            pl.BlockSpec((1, f_hid_p), lambda i: (0, 0)),        # be: resident
            pl.BlockSpec((f_hid_p, f_out_p), lambda i: (0, 0)),  # W:  resident
            pl.BlockSpec((1, f_out_p), lambda i: (0, 0)),        # b:  resident
        ],
        out_specs=(
            pl.BlockSpec((TB, f_out_p), lambda i: (i, 0)),       # z: batch-tiled
            pl.BlockSpec((None, 2, f_out_p), lambda i: (i, 0, 0)),  # per-tile stats
        ),
        compiler_params=pltpu.CompilerParams(
            # per-tile partial stats -> no carried accumulator -> megacore-shardable
            dimension_semantics=("parallel",),
            vmem_limit_bytes=budget,
        ),
        cost_estimate=pl.CostEstimate(
            flops=2 * B_p * (f_in_p * f_hid_p + f_hid_p * f_out_p),
            transcendentals=0,
            bytes_accessed=(xp.size * 2 + wep.size * 2 + wp.size * 2
                            + (bep.size + bp.size) * 4
                            + B_p * f_out_p * 2 + n_tiles * 2 * f_out_p * 4),
        ),
    )(xp, wep, bep, wp, bp)

    # tiny (n_tiles, 2, F) reduction of the per-tile partials (trivial XLA op)
    stats = jnp.sum(partial_stats, axis=0)
    # TODO(synk): PyTorch BatchNorm1d training mode also updates running_mean /
    # running_var (unbiased); compute & return them here if consumers need them.

    # ---- pass 2: normalize with global batch stats, affine, sigmoid -------------
    out_pad = pl.pallas_call(
        _make_bn_sigmoid_kernel(B),
        out_shape=jax.ShapeDtypeStruct((B_p, f_out_p), jnp.float32),
        grid=(n2,),
        in_specs=[
            pl.BlockSpec((TB2, f_out_p), lambda i: (i, 0)),      # z: batch-tiled (bf16)
            pl.BlockSpec((2, f_out_p), lambda i: (0, 0)),        # stats: resident
            pl.BlockSpec((1, f_out_p), lambda i: (0, 0)),        # gamma
            pl.BlockSpec((1, f_out_p), lambda i: (0, 0)),        # beta
        ],
        out_specs=pl.BlockSpec((TB2, f_out_p), lambda i: (i, 0)),
        compiler_params=pltpu.CompilerParams(
            dimension_semantics=("parallel",),  # independent tiles -> 2 TCs on v7x
            vmem_limit_bytes=budget,
        ),
        cost_estimate=pl.CostEstimate(
            flops=5 * B_p * f_out_p,
            transcendentals=2 * B_p * f_out_p,
            bytes_accessed=B_p * f_out_p * (2 + 4) + 8 * f_out_p * 4,
        ),
    )(z_pad, stats, gp, btp)

    # TODO(synk): expose a bf16 output dtype to halve pass-2 write traffic when the
    # caller does not need f32.
    return out_pad[:B, :f_out]


if __name__ == "__main__":
    # small deterministic shapes; tb=64 / tb2=128 exercise multi-tile pass 1,
    # coarser pass-2 tiling, and the last-tile batch-padding mask (B_p=256).
    B, in_features, layer_in, layer_out = 200, 16, 32, 8

    key = jax.random.PRNGKey(0)
    k_x, k_we, k_be, k_w, k_b = jax.random.split(key, 5)

    x = jax.random.normal(k_x, (B, in_features), jnp.float32)

    # encoder params (Linear(in_features, layer_in), torch-default-ish uniform)
    enc_bound = 1.0 / (in_features ** 0.5)
    we = jax.random.uniform(k_we, (in_features, layer_in), jnp.float32, -enc_bound, enc_bound)
    be = jax.random.uniform(k_be, (1, layer_in), jnp.float32, -enc_bound, enc_bound)

    # self.linear: xavier_uniform_ weight (stored transposed), default-uniform bias
    xav = (6.0 / (layer_in + layer_out)) ** 0.5
    w = jax.random.uniform(k_w, (layer_in, layer_out), jnp.float32, -xav, xav)
    lin_bound = 1.0 / (layer_in ** 0.5)
    b = jax.random.uniform(k_b, (1, layer_out), jnp.float32, -lin_bound, lin_bound)

    # BatchNorm1d affine params: gamma=1, beta=0 (PyTorch defaults)
    gamma = jnp.ones((1, layer_out), jnp.float32)
    beta = jnp.zeros((1, layer_out), jnp.float32)

    out = encoder_sigmoid(x, we, be, w, b, gamma, beta, tb=64, tb2=128)
    out = jax.block_until_ready(out)

    # pure-JAX reference mirroring the kernel's precision choices: bf16 MXU operands,
    # f32 accumulation, batch stats from f32 z, normalization applied to bf16 z.
    xb, web, wb = (t.astype(jnp.bfloat16) for t in (x, we, w))
    h_ref = jnp.maximum(jnp.dot(xb, web, preferred_element_type=jnp.float32) + be, 0.0)
    z_ref = jnp.dot(h_ref.astype(jnp.bfloat16), wb, preferred_element_type=jnp.float32) + b
    mu = z_ref.mean(0, keepdims=True)
    var = ((z_ref - mu) ** 2).mean(0, keepdims=True)
    z_bf = z_ref.astype(jnp.bfloat16).astype(jnp.float32)
    y_ref = jax.nn.sigmoid(gamma * (z_bf - mu) * jax.lax.rsqrt(var + BN_EPS) + beta)

    assert out.shape == (B, layer_out)
    assert jnp.allclose(out, y_ref, atol=5e-3, rtol=5e-3), "mismatch vs reference"

    print("KERNEL_OK")
</pallas_src>

<mosaic_0001>
module attributes {stable_mosaic.version = 11 : i64} {
  func.func @kernel(%arg0: i32, %arg1: memref<64x128xbf16, #tpu.memory_space<vmem>>, %arg2: memref<128x128xbf16, #tpu.memory_space<vmem>>, %arg3: memref<1x128xf32, #tpu.memory_space<vmem>>, %arg4: memref<128x128xbf16, #tpu.memory_space<vmem>>, %arg5: memref<1x128xf32, #tpu.memory_space<vmem>>, %arg6: memref<64x128xbf16, #tpu.memory_space<vmem>>, %arg7: memref<1x2x128xf32, #tpu.memory_space<vmem>>) attributes {dimension_semantics = [#tpu.dimension_semantics<parallel>], iteration_bounds = array<i64: 4>, scalar_prefetch = 0 : i64, scratch_operands = 0 : i64, tpu.core_type = #tpu.core_type<tc>, window_params = [{transform_indices = @transform_0, window_bounds = array<i64: 64, 128>}, {pipeline_mode = #tpu.pipeline_mode<synchronous>, transform_indices = @transform_1, window_bounds = array<i64: 128, 128>}, {pipeline_mode = #tpu.pipeline_mode<synchronous>, transform_indices = @transform_2, window_bounds = array<i64: 1, 128>}, {pipeline_mode = #tpu.pipeline_mode<synchronous>, transform_indices = @transform_3, window_bounds = array<i64: 128, 128>}, {pipeline_mode = #tpu.pipeline_mode<synchronous>, transform_indices = @transform_4, window_bounds = array<i64: 1, 128>}, {transform_indices = @transform_5, window_bounds = array<i64: 64, 128>}, {transform_indices = @transform_6, window_bounds = array<i64: 1, 2, 128>}]} {
    %c0 = arith.constant 0 : index
    %c0_0 = arith.constant 0 : index
    %0 = vector.load %arg1[%c0, %c0_0] : memref<64x128xbf16, #tpu.memory_space<vmem>>, vector<64x128xbf16>
    %c0_1 = arith.constant 0 : index
    %c0_2 = arith.constant 0 : index
    %1 = vector.load %arg2[%c0_1, %c0_2] : memref<128x128xbf16, #tpu.memory_space<vmem>>, vector<128x128xbf16>
    %cst = arith.constant dense<0.000000e+00> : vector<64x128xf32>
    %2 = tpu.matmul %0, %1, %cst {dimension_numbers = #tpu.dot_dimension_numbers<[1], [0], [0], [1], [0, 0, 1, 1], [], []>} : vector<64x128xbf16>, vector<128x128xbf16>, vector<64x128xf32> -> vector<64x128xf32>
    %c0_3 = arith.constant 0 : index
    %c0_4 = arith.constant 0 : index
    %3 = vector.load %arg3[%c0_3, %c0_4] : memref<1x128xf32, #tpu.memory_space<vmem>>, vector<1x128xf32>
    %4 = vector.broadcast %3 : vector<1x128xf32> to vector<64x128xf32>
    %5 = arith.addf %2, %4 : vector<64x128xf32>
    %cst_5 = arith.constant 0.000000e+00 : f32
    %6 = vector.broadcast %cst_5 : f32 to vector<64x128xf32>
    %7 = arith.maximumf %5, %6 : vector<64x128xf32>
    %8 = arith.truncf %7 : vector<64x128xf32> to vector<64x128xbf16>
    %c0_6 = arith.constant 0 : index
    %c0_7 = arith.constant 0 : index
    %9 = vector.load %arg4[%c0_6, %c0_7] : memref<128x128xbf16, #tpu.memory_space<vmem>>, vector<128x128xbf16>
    %cst_8 = arith.constant dense<0.000000e+00> : vector<64x128xf32>
    %10 = tpu.matmul %8, %9, %cst_8 {dimension_numbers = #tpu.dot_dimension_numbers<[1], [0], [0], [1], [0, 0, 1, 1], [], []>} : vector<64x128xbf16>, vector<128x128xbf16>, vector<64x128xf32> -> vector<64x128xf32>
    %c0_9 = arith.constant 0 : index
    %c0_10 = arith.constant 0 : index
    %11 = vector.load %arg5[%c0_9, %c0_10] : memref<1x128xf32, #tpu.memory_space<vmem>>, vector<1x128xf32>
    %12 = vector.broadcast %11 : vector<1x128xf32> to vector<64x128xf32>
    %13 = arith.addf %10, %12 : vector<64x128xf32>
    %14 = arith.truncf %13 : vector<64x128xf32> to vector<64x128xbf16>
    %c0_11 = arith.constant 0 : index
    %c0_12 = arith.constant 0 : index
    %15 = vector.load %arg6[%c0_11, %c0_12] : memref<64x128xbf16, #tpu.memory_space<vmem>>, vector<64x128xbf16>
    tpu.vector_store %arg6[%c0_11, %c0_12], %14 {strides = array<i32>} : memref<64x128xbf16, #tpu.memory_space<vmem>>, vector<64x128xbf16>,
    %c3_i32 = arith.constant 3 : i32
    %16 = arith.cmpi eq, %arg0, %c3_i32 : i32
    %true = arith.constant true
    %17 = arith.xori %16, %true : i1
    %18 = arith.extui %17 : i1 to i32
    %c0_i32 = arith.constant 0 : i32
    %19 = arith.cmpi ne, %18, %c0_i32 : i32
    scf.if %19 {
      %cst_14 = arith.constant dense<0.000000e+00> : vector<128xf32>
      %22 = vector.multi_reduction <add>, %13, %cst_14 [0] : vector<64x128xf32> to vector<128xf32>
      %23 = vector.shape_cast %22 : vector<128xf32> to vector<1x128xf32>
      %c0_15 = arith.constant 0 : index
      %c0_16 = arith.constant 0 : index
      %c0_17 = arith.constant 0 : index
      %24 = vector.load %arg7[%c0_15, %c0_16, %c0_17] : memref<1x2x128xf32, #tpu.memory_space<vmem>>, vector<1x1x128xf32>
      %25 = vector.shape_cast %24 : vector<1x1x128xf32> to vector<1x128xf32>
      %26 = vector.shape_cast %23 : vector<1x128xf32> to vector<1x1x128xf32>
      tpu.vector_store %arg7[%c0_15, %c0_16, %c0_17], %26 {strides = array<i32>} : memref<1x2x128xf32, #tpu.memory_space<vmem>>, vector<1x1x128xf32>,
      %27 = arith.mulf %13, %13 : vector<64x128xf32>
      %cst_18 = arith.constant dense<0.000000e+00> : vector<128xf32>
      %28 = vector.multi_reduction <add>, %27, %cst_18 [0] : vector<64x128xf32> to vector<128xf32>
      %29 = vector.shape_cast %28 : vector<128xf32> to vector<1x128xf32>
      %c0_19 = arith.constant 0 : index
      %c1 = arith.constant 1 : index
      %c0_20 = arith.constant 0 : index
      %30 = vector.load %arg7[%c0_19, %c1, %c0_20] : memref<1x2x128xf32, #tpu.memory_space<vmem>>, vector<1x1x128xf32>
      %31 = vector.shape_cast %30 : vector<1x1x128xf32> to vector<1x128xf32>
      %32 = vector.shape_cast %29 : vector<1x128xf32> to vector<1x1x128xf32>
      tpu.vector_store %arg7[%c0_19, %c1, %c0_20], %32 {strides = array<i32>} : memref<1x2x128xf32, #tpu.memory_space<vmem>>, vector<1x1x128xf32>,
    } else {
    }
    %20 = arith.extui %16 : i1 to i32
    %c0_i32_13 = arith.constant 0 : i32
    %21 = arith.cmpi ne, %20, %c0_i32_13 : i32
    scf.if %21 {
      %22 = tpu.iota {dimensions = array<i32: 0>} : vector<64x1xi32>
      %c8_i32 = arith.constant 8 : i32
      %23 = vector.broadcast %c8_i32 : i32 to vector<64x1xi32>
      %24 = arith.cmpi slt, %22, %23 : vector<64x1xi32>
      %cst_14 = arith.constant 0.000000e+00 : f32
      %25 = vector.shape_cast %24 : vector<64x1xi1> to vector<64x1xi1>
      %26 = vector.broadcast %25 : vector<64x1xi1> to vector<64x128xi1>
      %27 = vector.broadcast %cst_14 : f32 to vector<64x128xf32>
      %28 = arith.select %26, %13, %27 : vector<64x128xi1>, vector<64x128xf32>
      %cst_15 = arith.constant dense<0.000000e+00> : vector<128xf32>
      %29 = vector.multi_reduction <add>, %28, %cst_15 [0] : vector<64x128xf32> to vector<128xf32>
      %30 = vector.shape_cast %29 : vector<128xf32> to vector<1x128xf32>
      %c0_16 = arith.constant 0 : index
      %c0_17 = arith.constant 0 : index
      %c0_18 = arith.constant 0 : index
      %31 = vector.load %arg7[%c0_16, %c0_17, %c0_18] : memref<1x2x128xf32, #tpu.memory_space<vmem>>, vector<1x1x128xf32>
      %32 = vector.shape_cast %31 : vector<1x1x128xf32> to vector<1x128xf32>
      %33 = vector.shape_cast %30 : vector<1x128xf32> to vector<1x1x128xf32>
      tpu.vector_store %arg7[%c0_16, %c0_17, %c0_18], %33 {strides = array<i32>} : memref<1x2x128xf32, #tpu.memory_space<vmem>>, vector<1x1x128xf32>,
      %34 = arith.mulf %28, %28 : vector<64x128xf32>
      %cst_19 = arith.constant dense<0.000000e+00> : vector<128xf32>
      %35 = vector.multi_reduction <add>, %34, %cst_19 [0] : vector<64x128xf32> to vector<128xf32>
      %36 = vector.shape_cast %35 : vector<128xf32> to vector<1x128xf32>
      %c0_20 = arith.constant 0 : index
      %c1 = arith.constant 1 : index
      %c0_21 = arith.constant 0 : index
      %37 = vector.load %arg7[%c0_20, %c1, %c0_21] : memref<1x2x128xf32, #tpu.memory_space<vmem>>, vector<1x1x128xf32>
      %38 = vector.shape_cast %37 : vector<1x1x128xf32> to vector<1x128xf32>
      %39 = vector.shape_cast %36 : vector<1x128xf32> to vector<1x1x128xf32>
      tpu.vector_store %arg7[%c0_20, %c1, %c0_21], %39 {strides = array<i32>} : memref<1x2x128xf32, #tpu.memory_space<vmem>>, vector<1x1x128xf32>,
    } else {
    }
    return
  }
  func.func @transform_0(%arg0: i32) -> (i32, i32) {
    %c0_i32 = arith.constant 0 : i32
    %c0_i32_0 = arith.constant 0 : i32
    return %arg0, %c0_i32 : i32, i32
  }
  func.func @transform_1(%arg0: i32) -> (i32, i32) {
    %c0_i32 = arith.constant 0 : i32
    %c0_i32_0 = arith.constant 0 : i32
    %c0_i32_1 = arith.constant 0 : i32
    return %c0_i32, %c0_i32_0 : i32, i32
  }
  func.func @transform_2(%arg0: i32) -> (i32, i32) {
    %c0_i32 = arith.constant 0 : i32
    %c0_i32_0 = arith.constant 0 : i32
    %c0_i32_1 = arith.constant 0 : i32
    return %c0_i32, %c0_i32_0 : i32, i32
  }
  func.func @transform_3(%arg0: i32) -> (i32, i32) {
    %c0_i32 = arith.constant 0 : i32
    %c0_i32_0 = arith.constant 0 : i32
    %c0_i32_1 = arith.constant 0 : i32
    return %c0_i32, %c0_i32_0 : i32, i32
  }
  func.func @transform_4(%arg0: i32) -> (i32, i32) {
    %c0_i32 = arith.constant 0 : i32
    %c0_i32_0 = arith.constant 0 : i32
    %c0_i32_1 = arith.constant 0 : i32
    return %c0_i32, %c0_i32_0 : i32, i32
  }
  func.func @transform_5(%arg0: i32) -> (i32, i32) {
    %c0_i32 = arith.constant 0 : i32
    %c0_i32_0 = arith.constant 0 : i32
    return %arg0, %c0_i32 : i32, i32
  }
  func.func @transform_6(%arg0: i32) -> (i32, i32, i32) {
    %c0_i32 = arith.constant 0 : i32
    %c0_i32_0 = arith.constant 0 : i32
    %c0_i32_1 = arith.constant 0 : i32
    return %arg0, %c0_i32, %c0_i32_0 : i32, i32, i32
  }
}

</mosaic_0001>

<bundles_post_ra>
// kernel: tpu_custom_call.1
= control target key start
LH: loop header
LB: loop body
LE: loop exit
PB: predicated region body
PF: predicated region fallthrough
CT: control target
= control target key end

     0   :  { %s1672_s0 = inlined_call_operand.hbm [shape: bf16[256,128], index: 0, kind: input, shape index: {}]   ;;  %s1673_s1 = inlined_call_operand.hbm [shape: bf16[128,128], index: 1, kind: input, shape index: {}]   ;;  %s1674_s2 = inlined_call_operand.vmem [shape: f32[1,128], index: 2, kind: input, shape index: {}]   ;;  %s1675_s3 = inlined_call_operand.hbm [shape: bf16[128,128], index: 3, kind: input, shape index: {}]   ;;  %s1676_s4 = inlined_call_operand.vmem [shape: f32[1,128], index: 4, kind: input, shape index: {}]   ;;  %s1677_s5 = inlined_call_operand.hbm [shape: bf16[256,128], index: 5, kind: output, shape index: {0}]   ;;  %s1678_s6 = inlined_call_operand.hbm [shape: f32[4,2,128], index: 6, kind: output, shape index: {1}]  }
   0x1   :  { %1686 = sst [smem:[#allocation15_spill]] %s1672_s0 }
   0x2   :  { %1687 = sst [smem:[#allocation16_spill]] %s1673_s1 }
   0x3   :  { %12 = vsyncpa [#allocation3], 0 }
   0x4   :  { %14 = vsyncpa [#allocation3 + $0x1], 0 }
   0x5   :  { %15 = vsyncpa [#allocation6], 0 }
   0x6   :  { %16 = vsyncpa [#allocation4], 0 }
   0x7   :  { %18 = vsyncpa [#allocation4 + $0x1], 0 }
   0x8   :  { %19 = vsyncpa [#allocation10], 0 }
   0x9   :  { %21 = vsyncpa [#allocation10 + $0x1], 0  ;;  %s1424_s21 = smov 0   ;;  %s1426_s22 = smov 0  }
   0xa   :  { %s1428_s23 = smov 0   ;;  %s1430_s24 = smov 0  }
   0xb LB: > { %s1445_s25 = sadd.s32 4294967295, %s1378_s24   ;;  %s946_s26 = sadd.s32 4294967294, %s1378_s24   ;;  %s1378_s24 = sphi %s1430_s24, %s1708_s24   ;;  %s1374_s23 = sphi %s1428_s23, %s1707_s23   ;;  %s1370_s22 = sphi %s1426_s22, %s1706_s22   ;;  %s1366_s21 = sphi %s1424_s21, %s1705_s21  }
   0xc   : > { %p47_p0 = scmp.ne.s32.totalorder %s1370_s22, %s1366_s21  ;;  %p1680_p1 = scmp.eq.s32.totalorder %s1445_s25, 0 }
   0xd   : > { %p1679_p2 = scmp.eq.s32.totalorder %s1445_s25, 3  ;;  %p161_p3 = scmp.eq.s32.totalorder %s946_s26, 3 }
   0xe   : > { %p1454_p4 = por %p1680_p1, %p47_p0  ;;  %p947_p5 = scmp.ge.s32.totalorder %s1378_s24, 1 }
   0xf   : > { %p1459_p6 = por %p161_p3, %p47_p0  ;;  %p194_p7 = scmp.lt.s32.totalorder %s1378_s24, 5 }
  0x10   : > { %s1688_s27 = scalar_select %p1454_p4, 1, 0 }
  0x11   : > { %s1689_s28 = scalar_select %p1459_p6, 1, 0 }
  0x12   : > { %p1464_p8 = pnand %p947_p5, %p194_p7  ;;  %s1380_s30 = smov [#allocation5]  }
  0x13   : > { %s206_s7 = sshll.u32 %s1380_s30, 4  ;;  %s1381_s9 = smov [#allocation7]   ;;  %s207_s7 = int_to_ptr.vmem [resolvable:$true] %s206_s7 }
  0x14   : > { %s1690_s29 = scalar_select %p1464_p8, 1, 0 }
  0x15   : > { %p1118_p9 = pneg %p1464_p8  ;;  %s222_s10 = sshll.u32 %s1381_s9, 4  ;;  %s223_s10 = int_to_ptr.vmem [resolvable:$true] %s222_s10 }
  0x16   : > { %s1211_s11 = scalar_lea.vmem %s207_s7, 1024  ;;  %p1219_p3 = scmp.lt.s32.totalorder %s207_s7, %s207_s7 }
  0x17   : > { %p1472_p10 = pnand %p1118_p9, %p1680_p1  ;;  %p1212_p12 = scmp.ne.s32.totalorder %s207_s7, %s1211_s11 }
  0x18   : > { %p1220_p5 = scmp.lt.s32.totalorder %s1211_s11, %s1211_s11 }
  0x19   : > { %p1202_p11 = pneg %p1472_p10 }
  0x1a   : > { %p1221_p7 = por %p1220_p5, %p1219_p3 }
  0x1b   : > { %p1214_p13 = pnand %p1212_p12, %p1202_p11 }
  0x1d   : > { %p1215_p0 = pneg %p1214_p13 }
  0x1f   : > { %p1222_p9 = pnand %p1221_p7, %p1215_p0 }
  0x21   : > { %1225 = shalt.err (!%p1222_p9)
}
  0x22   : > { %s1681_s12 = smov 64   ;;  %s1682_s13 = smov 4  }
  0x23   : > { %s1692_s1 = sld [smem:[#allocation16_spill]]  ;;  %s1237_s16 = scalar_lea.vmem %s223_s10, 1024 }
  0x24   : > { %p1238_p12 = scmp.ne.s32.totalorder %s223_s10, %s1237_s16  ;;  %p1245_p0 = scmp.lt.s32.totalorder %s223_s10, %s223_s10 }
  0x25   : > { %p1246_p5 = scmp.lt.s32.totalorder %s1237_s16, %s1237_s16 }
  0x26   : > { %p1240_p13 = pnand %p1238_p12, %p1202_p11 }
  0x27   : > { %p1247_p7 = por %p1246_p5, %p1245_p0 }
  0x28   : > { %p1241_p3 = pneg %p1240_p13 }
  0x29   : > { %1121 = dma.hbm_to_vmem [thread:$0]  (!%p1472_p10), %s1692_s1, 1024, %s207_s7, [#allocation6], %s1681_s12, %s1681_s12, %s1682_s13  }
  0x2a   : > { %p1248_p9 = pnand %p1247_p7, %p1241_p3 }
  0x2c   : > { %1251 = shalt.err (!%p1248_p9)
}
  0x2d   : > { %1124 = dma.hbm_to_vmem [thread:$0]  (!%p1472_p10), %s1675_s3, 1024, %s223_s10, [#allocation6], %s1681_s12, %s1681_s12, %s1682_s13  }
  0x2e   : > { %s1501_s19 = sadd.s32 1, %s1378_s24   ;;  %s34_s20 = sadd.s32 1, %s1374_s23 }
  0x2f   : > { %s31_s26 = ssub.s32 %s1378_s24, %s1501_s19  ;;  %p41_p11 = scmp.ne.s32.totalorder %s1374_s23, %s1370_s22 }
  0x30   : > { %p32_p12 = scmp.eq.s32.totalorder %s31_s26, 0  ;;  %p42_p13 = scmp.eq.s32.totalorder %s1378_s24, 0 }
  0x31   : > { %p1511_p3 = por %p1679_p2, %p41_p11  ;;  %p1138_p0 = scmp.lt.s32.totalorder %s1378_s24, 4 }
  0x32   : > { %s1517_s7 = scalar_select %p32_p12, %s1374_s23, %s34_s20  }
  0x33   : > { %s1693_s30 = scalar_select %p1511_p3, 1, 0 }
  0x34   : > { %p43_p5 = por %p42_p13, %p41_p11  ;;  %s239_s8 = sand.u32 1, %s1374_s23  }
  0x35   : > { %s951_s9 = sshll.u32 %s239_s8, 5  ;;  %s999_s10 = sshll.u32 %s1378_s24, 9 }
  0x36   : > { %s1694_s0 = sld [smem:[#allocation15_spill]]  ;;  %s243_s16 = scalar_lea.vmem [#allocation2], %s951_s9 }
  0x37   : > { %s250_s17 = sshll.u32 %s243_s16, 4  ;;  %p1528_p10 = pnand %p1138_p0, %p43_p5  ;;  %s1526_s17 = int_to_ptr.vmem [resolvable:$true] %s250_s17 }
  0x38   : > { %s1532_s20 = scalar_lea.sflag [#allocation3], %s239_s8 }
  0x39   : > { %p1254_p9 = pneg %p1528_p10 }
  0x3c   : > { %s1524_s15 = scalar_lea.hbm %s1694_s0, %s999_s10  ;;  %s1257_s9 = scalar_lea.hbm %s1694_s0, 2048 }
  0x3d   : > { %s1252_s26 = scalar_lea.hbm %s1524_s15, 512  ;;  %p1258_p13 = scmp.lt.s32.totalorder %s1524_s15, %s1694_s0 }
  0x3e   : > { %p1253_p7 = scmp.ne.s32.totalorder %s1524_s15, %s1252_s26  ;;  %p1259_p0 = scmp.lt.s32.totalorder %s1257_s9, %s1252_s26 }
  0x40   : > { %p1255_p11 = pnand %p1254_p9, %p1253_p7  ;;  %p1260_p5 = por %p1259_p0, %p1258_p13 }
  0x42   : > { %p1256_p12 = pneg %p1255_p11 }
  0x44   : > { %p1261_p2 = pnand %p1260_p5, %p1256_p12 }
  0x46   : > { %1264 = shalt.err (!%p1261_p2)
}
  0x47   : > { %s1265_s8 = scalar_lea.vmem %s1526_s17, 512  ;;  %s1384_s12 = smov [#allocation2]  }
  0x48   : > { %p1266_p1 = scmp.ne.s32.totalorder %s1526_s17, %s1265_s8  ;;  %s1270_s13 = sshll.u32 %s1384_s12, 4  ;;  %s1271_s13 = int_to_ptr.vmem [resolvable:$false] %s1270_s13 }
  0x49   : > { %s1272_s10 = scalar_lea.vmem %s1271_s13, 1024  ;;  %p1273_p11 = scmp.lt.s32.totalorder %s1526_s17, %s1271_s13 }
  0x4a   : > { %p1268_p6 = pnand %p1266_p1, %p1254_p9  ;;  %p1274_p3 = scmp.lt.s32.totalorder %s1272_s10, %s1265_s8 }
  0x4c   : > { %p1269_p7 = pneg %p1268_p6  ;;  %p1275_p4 = por %p1274_p3, %p1273_p11 }
  0x4e   : > { %p1276_p8 = pnand %p1275_p4, %p1269_p7 }
  0x50   : > { %1279 = shalt.err (!%p1276_p8)
}
  0x51   : > { %s1696_s26 = smov 4   ;;  %s1697_s11 = smov 64  }
  0x52   : > { %1128 = dma.hbm_to_vmem [thread:$0]  (!%p1528_p10), %s1524_s15, 512, %s1526_s17, %s1532_s20, %s1697_s11, %s1697_s11, %s1696_s26  }
  0x53   : > { %p1698_p1 = scmp.ne.s32.totalorder %s1690_s29, 0 }
  0x54   : > { %s1559_s12 = sand.u32 (!%p1698_p1), 1, %s1370_s22   ;;  %p1699_p2 = scmp.ne.s32.totalorder (!%p1698_p1), %s1688_s27, 0 }
  0x55   : > { %262 = sbr.rel (%p1698_p1) target bundleno = 644 (0x284), region = 40  ;;  %s955_s13 = sshll.u32 (!%p1698_p1), %s1559_s12, 5 }
  0x56   : > { %s265_s9 = scalar_lea.sflag (!%p1698_p1), [#allocation3], %s1559_s12  ;;  %s1565_s18 = scalar_lea.vmem (!%p1698_p1), [#allocation2], %s955_s13 }
  0x5a   : > { %1349 = dma.done.wait (%p1699_p2), %s265_s9, 512  }
  0x5b   : > { %1351 = vsyncadd (%p1699_p2), %s265_s9, 4294966784  ;;  %p1700_p4 = scmp.eq.s32.totalorder %s1445_s25, 0 }
  0x5d   : > { %1353 = dma.done.wait (%p1700_p4), [#allocation6], 2048   ;;  %p1701_p6 = pmov %p1700_p4 }
  0x5e   : > { %s959_s29 = sshll.u32 %s1559_s12, 1  ;;  %v1180_v0 = vld [vmem:[#allocation5 + $0x38] sm:$0xff]   ;;  %v1181_v1 = vld [vmem:[#allocation5 + $0x30] sm:$0xff]   ;;  %v1182_v2 = vld [vmem:[#allocation5 + $0x28] sm:$0xff]   ;;  %s1588_s14 = scalar_lea.vmem [#allocation8], %s955_s13 }
  0x5f   : > { %1355 = vsyncadd (%p1701_p6), [#allocation6], 4294965248  ;;  %1056 = vmatprep.subr.bf16.mxu0 %v1180_v0  ;;  %v1183_v3 = vld [vmem:[#allocation5 + $0x20] sm:$0xff]   ;;  %v1184_v5 = vld [vmem:[#allocation5 + $0x18] sm:$0xff]   ;;  %s1596_s16 = scalar_lea.vmem [#allocation9], %s959_s29  ;;  %p1702_p8 = scmp.eq.s32.totalorder %s1445_s25, 3 }
  0x60   : > { %1057 = vmatpush3.bf16.msra.mxu0 %v1180_v0  ;;  %v1188_v4 = vld [vmem:[%s1565_s18] sm:$0xff]   ;;  %v1192_v6 = vld [vmem:[#allocation7 + $0x38] sm:$0xff]   ;;  %v1193_v7 = vld [vmem:[#allocation7 + $0x30] sm:$0xff]  }
  0x61   : > { %1058 = vmatprep.subr.bf16.mxu0 %v1181_v1  ;;  %1072 = vmatprep.mubr.bf16.mxu0 %v1188_v4  ;;  %v1185_v8 = vld [vmem:[#allocation5 + $0x10] sm:$0xff]   ;;  %v1194_v9 = vld [vmem:[#allocation7 + $0x28] sm:$0xff]   ;;  %v1195_v11 = vld [vmem:[#allocation7 + $0x20] sm:$0xff]  }
  0x62   : > { %1080 = vmatprep.subr.bf16.mxu1 %v1192_v6  ;;  %v1186_v10 = vld [vmem:[#allocation5 + $0x8] sm:$0xff]   ;;  %v1187_v12 = vld [vmem:[#allocation5] sm:$0xff]   ;;  %v1196_v13 = vld [vmem:[#allocation7 + $0x18] sm:$0xff]  }
  0x63   : > { %1081 = vmatpush3.bf16.msra.mxu1 %v1192_v6  ;;  %v1189_v14 = vld [vmem:[%s1565_s18 + $0x8] sm:$0xff]   ;;  %v1190_v15 = vld [vmem:[%s1565_s18 + $0x10] sm:$0xff]   ;;  %v1191_v16 = vld [vmem:[%s1565_s18 + $0x18] sm:$0xff]  }
  0x64   : > { %1059 = vmatpush3.bf16.msra.mxu0 %v1181_v1  ;;  %1082 = vmatprep.subr.bf16.mxu1 %v1193_v7  ;;  %v1197_v17 = vld [vmem:[#allocation7 + $0x10] sm:$0xff]   ;;  %v1198_v18 = vld [vmem:[#allocation7 + $0x8] sm:$0xff]   ;;  %v1199_v19 = vld [vmem:[#allocation7] sm:$0xff]  }
  0x65   : > { %1060 = vmatprep.subr.bf16.mxu0 %v1182_v2  ;;  %v960_v22 = vld [vmem:[%s1674_s2] ss:$0 sm:$0xff] }
  0x66   : > { %v973_v50 = vld [vmem:[%s1676_s4] ss:$0 sm:$0xff] }
  0x67   : > { %1083 = vmatpush3.bf16.msra.mxu1 %v1193_v7 }
  0x68   : > { %1061 = vmatpush3.bf16.msra.mxu0 %v1182_v2  ;;  %1084 = vmatprep.subr.bf16.mxu1 %v1194_v9 }
  0x69   : > { %1062 = vmatprep.subr.bf16.mxu0 %v1183_v3 }
  0x6b   : > { %1085 = vmatpush3.bf16.msra.mxu1 %v1194_v9 }
  0x6c   : > { %1063 = vmatpush3.bf16.msra.mxu0 %v1183_v3  ;;  %1086 = vmatprep.subr.bf16.mxu1 %v1195_v11 }
  0x6d   : > { %1064 = vmatprep.subr.bf16.mxu0 %v1184_v5 }
  0x6f   : > { %1087 = vmatpush3.bf16.msra.mxu1 %v1195_v11 }
  0x70   : > { %1065 = vmatpush3.bf16.msra.mxu0 %v1184_v5  ;;  %1088 = vmatprep.subr.bf16.mxu1 %v1196_v13 }
  0x71   : > { %1066 = vmatprep.subr.bf16.mxu0 %v1185_v8 }
  0x73   : > { %1089 = vmatpush3.bf16.msra.mxu1 %v1196_v13 }
  0x74   : > { %1067 = vmatpush3.bf16.msra.mxu0 %v1185_v8  ;;  %1090 = vmatprep.subr.bf16.mxu1 %v1197_v17 }
  0x75   : > { %1068 = vmatprep.subr.bf16.mxu0 %v1186_v10 }
  0x77   : > { %1091 = vmatpush3.bf16.msra.mxu1 %v1197_v17 }
  0x78   : > { %1069 = vmatpush3.bf16.msra.mxu0 %v1186_v10  ;;  %1092 = vmatprep.subr.bf16.mxu1 %v1198_v18 }
  0x79   : > { %1070 = vmatprep.subr.bf16.mxu0 %v1187_v12 }
  0x7b   : > { %1093 = vmatpush3.bf16.msra.mxu1 %v1198_v18 }
  0x7c   : > { %1071 = vmatpush3.bf16.msra.mxu0 %v1187_v12  ;;  %1094 = vmatprep.subr.bf16.mxu1 %v1199_v19 }
  0x7f   : > { %1073 = vmatmul.mubr.bf16.vlgmr.msra.gmra.mxu0 %v1189_v14  ;;  %1095 = vmatpush3.bf16.msra.mxu1 %v1199_v19 }
  0x80   : > { %1076 = vmatprep.mubr.bf16.mxu0 %v1190_v15 }
  0x87   : > { %1077 = vmatmul.mubr.bf16.gmra.mxu0 %v1191_v16 }
 0x13f   : > { %v1074_v20 = vpop.f32.mrf.mxu0 }
 0x140   : > { %v459_v26 = vadd.f32 %v1074_v20, %v960_v22 }
 0x141   : > { %v450_v21 = vpop.f32.mrf.mxu0 }
 0x142   : > { %v451_v24 = vadd.f32 %v960_v22, %v450_v21  ;;  %v483_v33 = vmax.f32 %v459_v26, 0.0 }
 0x143   : > { %v1075_v23 = vpop.f32.mrf.mxu0 }
 0x144   : > { %v462_v25 = vadd.f32 %v1075_v23, %v960_v22  ;;  %v481_v31 = vmax.f32 %v451_v24, 0.0 }
 0x145   : > { %v453_v27 = vpop.f32.mrf.mxu0 }
 0x146   : > { %v454_v28 = vadd.f32 %v960_v22, %v453_v27  ;;  %v484_v29 = vmax.f32 %v462_v25, 0.0 }
 0x147   : > { %v1078_v30 = vpop.f32.mrf.mxu0 }
 0x148   : > { %v482_v32 = vmax.f32 %v454_v28, 0.0  ;;  %v490_v36 = vpack.c.bf16 %v484_v29, %v483_v33  ;;  %v475_v40 = vadd.f32 %v1078_v30, %v960_v22 }
 0x149   : > { %v466_v34 = vpop.f32.mrf.mxu0 }
 0x14a   : > { %v489_v35 = vpack.c.bf16 %v482_v32, %v481_v31  ;;  %v467_v38 = vadd.f32 %v960_v22, %v466_v34  ;;  %v487_v46 = vmax.f32 %v475_v40, 0.0 }
 0x14b   : > { %v1079_v37 = vpop.f32.mrf.mxu0 }
 0x14c   : > { %v478_v39 = vadd.f32 %v1079_v37, %v960_v22  ;;  %1096 = vmatprep.mubr.bf16.mxu1 %v489_v35  ;;  %v485_v44 = vmax.f32 %v467_v38, 0.0 }
 0x14d   : > { %v469_v41 = vpop.f32.mrf.mxu0  ;;  %1097 = vmatmul.mubr.bf16.vlgmr.msra.gmra.mxu1 %v490_v36 }
 0x14e   : > { %v470_v42 = vadd.f32 %v960_v22, %v469_v41  ;;  %v488_v43 = vmax.f32 %v478_v39, 0.0 }
 0x150   : > { %v486_v45 = vmax.f32 %v470_v42, 0.0  ;;  %v492_v48 = vpack.c.bf16 %v488_v43, %v487_v46 }
 0x152   : > { %v491_v47 = vpack.c.bf16 %v486_v45, %v485_v44 }
 0x154   : > { %1100 = vmatprep.mubr.bf16.mxu1 %v491_v47 }
 0x155   : > { %1101 = vmatmul.mubr.bf16.gmra.mxu1 %v492_v48 }
 0x20d   : > { %v1098_v49 = vpop.f32.mrf.mxu1 }
 0x20e   : > { %v607_v53 = vadd.f32 %v1098_v49, %v973_v50 }
 0x20f   : > { %v598_v51 = vpop.f32.mrf.mxu1 }
 0x210   : > { %v599_v56 = vadd.f32 %v973_v50, %v598_v51 }
 0x211   : > { %v1099_v52 = vpop.f32.mrf.mxu1 }
 0x212   : > { %v610_v54 = vadd.f32 %v1099_v52, %v973_v50 }
 0x213   : > { %v601_v55 = vpop.f32.mrf.mxu1 }
 0x214   : > { %v1017_v57 = vpack.c.bf16 %v610_v54, %v607_v53  ;;  %v602_v58 = vadd.f32 %v973_v50, %v601_v55 }
 0x215   : > { %v1102_v59 = vpop.f32.mrf.mxu1 }
 0x216   : > { %1029 = vst [vmem:[%s1588_s14 + $0x8] sm:$0xff] %v1017_v57   ;;  %v1012_v60 = vpack.c.bf16 %v602_v58, %v599_v56  ;;  %v623_v63 = vadd.f32 %v1102_v59, %v973_v50 }
 0x217   : > { %v614_v61 = vpop.f32.mrf.mxu1 }
 0x218   : > { %1013 = vst [vmem:[%s1588_s14] sm:$0xff] %v1012_v60   ;;  %v615_v2 = vadd.f32 %v973_v50, %v614_v61 }
 0x219   : > { %v1103_v62 = vpop.f32.mrf.mxu1 }
 0x21a   : > { %v626_v0 = vadd.f32 %v1103_v62, %v973_v50 }
 0x21b   : > { %v617_v1 = vpop.f32.mrf.mxu1 }
 0x21c   : > { %v1027_v3 = vpack.c.bf16 %v626_v0, %v623_v63  ;;  %v618_v4 = vadd.f32 %v973_v50, %v617_v1  ;;  %673 = sbr.rel (%p1702_p8) target bundleno = 574 (0x23e), region = 56 }
 0x21e   : > { %1031 = vst [vmem:[%s1588_s14 + $0x18] sm:$0xff] %v1027_v3   ;;  %v1022_v5 = vpack.c.bf16 %v618_v4, %v615_v2 }
 0x220   : > { %1030 = vst [vmem:[%s1588_s14 + $0x10] sm:$0xff] %v1022_v5  }
 0x221   : > { %v674_v6 = vadd.f32 %v602_v58, %v599_v56  ;;  %v688_v7 = vmul.f32 %v599_v56, %v599_v56  ;;  %v689_v8 = vmul.f32 %v602_v58, %v602_v58  ;;  %v690_v9 = vmul.f32 %v607_v53, %v607_v53 }
 0x222   : > { %v691_v11 = vmul.f32 %v610_v54, %v610_v54  ;;  %v692_v14 = vmul.f32 %v615_v2, %v615_v2  ;;  %v693_v17 = vmul.f32 %v618_v4, %v618_v4  ;;  %v694_v20 = vmul.f32 %v623_v63, %v623_v63 }
 0x223   : > { %v675_v10 = vadd.f32 %v674_v6, %v607_v53  ;;  %v696_v12 = vadd.f32 %v689_v8, %v688_v7  ;;  %v695_v23 = vmul.f32 %v626_v0, %v626_v0 }
 0x225   : > { %v676_v13 = vadd.f32 %v675_v10, %v610_v54  ;;  %v697_v15 = vadd.f32 %v696_v12, %v690_v9 }
 0x227   : > { %v677_v16 = vadd.f32 %v676_v13, %v615_v2  ;;  %v698_v18 = vadd.f32 %v697_v15, %v691_v11 }
 0x229   : > { %v678_v19 = vadd.f32 %v677_v16, %v618_v4  ;;  %v699_v21 = vadd.f32 %v698_v18, %v692_v14 }
 0x22b   : > { %v679_v22 = vadd.f32 %v678_v19, %v623_v63  ;;  %v700_v24 = vadd.f32 %v699_v21, %v693_v17 }
 0x22d   : > { %v680_v25 = vadd.f32 %v679_v22, %v626_v0  ;;  %v701_v26 = vadd.f32 %v700_v24, %v694_v20 }
 0x22f   : > { %v681_v27 = vrot.slane %v680_v25, 4  ;;  %v702_v28 = vadd.f32 %v701_v26, %v695_v23 }
 0x231   : > { %v682_v29 = vadd.f32 %v681_v27, %v680_v25  ;;  %v703_v30 = vrot.slane %v702_v28, 4 }
 0x233   : > { %v683_v31 = vrot.slane %v682_v29, 2  ;;  %v704_v32 = vadd.f32 %v703_v30, %v702_v28 }
 0x235   : > { %v684_v33 = vadd.f32 %v683_v31, %v682_v29  ;;  %v705_v34 = vrot.slane %v704_v32, 2 }
 0x237   : > { %v685_v35 = vrot.slane %v684_v33, 1  ;;  %v706_v36 = vadd.f32 %v705_v34, %v704_v32 }
 0x239   : > { %v686_v37 = vadd.f32 %v685_v35, %v684_v33  ;;  %v707_v38 = vrot.slane %v706_v36, 1 }
 0x23b   : > { %687 = vst [vmem:[%s1596_s16] sm:$0x1] %v686_v37  ;;  %v708_v39 = vadd.f32 %v707_v38, %v706_v36 }
 0x23d   : > { %709 = vst [vmem:[%s1596_s16 + $0x1] sm:$0x1] %v708_v39 }
 0x23e PF: > { %p991_p3 = scmp.ne.s32.totalorder %s1445_s25, 3 }
 0x240   : > { %712 = sbr.rel (%p991_p3) target bundleno = 596 (0x254), region = 60 }
 0x245   : > { %v761_v40 = vrot.slane %v599_v56, 4  ;;  %v768_v41 = vmul.f32 %v599_v56, %v599_v56 }
 0x247   : > { %v762_v42 = vadd.f32 %v761_v40, %v599_v56  ;;  %v783_v43 = vrot.slane %v768_v41, 4 }
 0x249   : > { %v763_v44 = vrot.slane %v762_v42, 2  ;;  %v784_v45 = vadd.f32 %v783_v43, %v768_v41 }
 0x24b   : > { %v764_v46 = vadd.f32 %v763_v44, %v762_v42  ;;  %v785_v47 = vrot.slane %v784_v45, 2 }
 0x24d   : > { %v765_v48 = vrot.slane %v764_v46, 1  ;;  %v786_v49 = vadd.f32 %v785_v47, %v784_v45 }
 0x24f   : > { %v766_v50 = vadd.f32 %v765_v48, %v764_v46  ;;  %v787_v51 = vrot.slane %v786_v49, 1 }
 0x251   : > { %767 = vst [vmem:[%s1596_s16] sm:$0x1] %v766_v50  ;;  %v788_v52 = vadd.f32 %v787_v51, %v786_v49 }
 0x253   : > { %789 = vst [vmem:[%s1596_s16 + $0x1] sm:$0x1] %v788_v52 }
 0x254 PF: > { %s1008_s8 = sshll.u32 %s1445_s25, 9  ;;  %s809_s13 = sshll.u32 %s1588_s14, 4  ;;  %s1612_s13 = int_to_ptr.vmem [resolvable:$true] %s809_s13 }
 0x255   : > { %s1609_s11 = scalar_lea.hbm %s1677_s5, %s1008_s8  ;;  %s791_s9 = scalar_lea.sflag [#allocation4], %s1559_s12 }
 0x256   : > { %s1280_s18 = scalar_lea.vmem %s1612_s13, 512  ;;  %p1703_p9 = scmp.ne.s32.totalorder %s1693_s30, 0 }
 0x257   : > { %p1281_p10 = scmp.ne.s32.totalorder %s1612_s13, %s1280_s18  ;;  %s1385_s29 = smov [#allocation8]  }
 0x258   : > { %s1284_s27 = sshll.u32 %s1385_s29, 4  ;;  %s1285_s27 = int_to_ptr.vmem [resolvable:$false] %s1284_s27 }
 0x259   : > { %p1282_p12 = pnand %p1281_p10, %p1703_p9  ;;  %s1286_s15 = scalar_lea.vmem %s1285_s27, 1024 }
 0x25a   : > { %p1287_p0 = scmp.lt.s32.totalorder %s1612_s13, %s1285_s27  ;;  %p1288_p5 = scmp.lt.s32.totalorder %s1286_s15, %s1280_s18 }
 0x25b   : > { %p1283_p13 = pneg %p1282_p12 }
 0x25c   : > { %p1289_p7 = por %p1288_p5, %p1287_p0 }
 0x25e   : > { %p1290_p11 = pnand %p1289_p7, %p1283_p13 }
 0x260   : > { %1293 = shalt.err (!%p1290_p11)
}
 0x261   : > { %s1294_s17 = scalar_lea.hbm %s1609_s11, 512  ;;  %s1298_s8 = scalar_lea.hbm %s1677_s5, 2048 }
 0x262   : > { %p1295_p1 = scmp.ne.s32.totalorder %s1609_s11, %s1294_s17  ;;  %p1299_p6 = scmp.lt.s32.totalorder %s1609_s11, %s1677_s5 }
 0x263   : > { %p1300_p8 = scmp.lt.s32.totalorder %s1298_s8, %s1294_s17 }
 0x264   : > { %p1296_p2 = pnand %p1295_p1, %p1703_p9 }
 0x265   : > { %p1301_p3 = por %p1300_p8, %p1299_p6 }
 0x266   : > { %p1297_p4 = pneg %p1296_p2 }
 0x268   : > { %p1302_p10 = pnand %p1301_p3, %p1297_p4 }
 0x26a   : > { %1305 = shalt.err (!%p1302_p10)
}
 0x26b   : > { %s1386_s18 = smov 64   ;;  %s1387_s29 = smov 4  }
 0x26c   : > { %1114 = dma.vmem_to_hbm [thread:$0]  (%p1703_p9), %s1612_s13, 512, %s1609_s11, %s791_s9, %s1386_s18, %s1386_s18, %s1387_s29  }
 0x26d   : > { %s996_s27 = sshll.u32 %s1445_s25, 5  ;;  %s825_s15 = sshll.u32 %s1596_s16, 4  ;;  %s826_s15 = int_to_ptr.vmem [resolvable:$true] %s825_s15 }
 0x26e   : > { %s823_s14 = scalar_lea.hbm %s1678_s6, %s996_s27  ;;  %s796_s8 = scalar_lea.sflag [#allocation10], %s1559_s12 }
 0x26f   : > { %s1306_s10 = scalar_lea.vmem %s826_s15, 32  ;;  %s1388_s26 = smov [#allocation9]  }
 0x270   : > { %p1307_p12 = scmp.ne.s32.totalorder %s826_s15, %s1306_s10  ;;  %s1310_s0 = sshll.u32 %s1388_s26, 4  ;;  %s1311_s0 = int_to_ptr.vmem [resolvable:$false] %s1310_s0 }
 0x271   : > { %s1312_s1 = scalar_lea.vmem %s1311_s0, 64  ;;  %p1313_p5 = scmp.lt.s32.totalorder %s826_s15, %s1311_s0 }
 0x272   : > { %p1308_p13 = pnand %p1307_p12, %p1703_p9  ;;  %p1314_p7 = scmp.lt.s32.totalorder %s1312_s1, %s1306_s10 }
 0x274   : > { %p1309_p0 = pneg %p1308_p13  ;;  %p1315_p11 = por %p1314_p7, %p1313_p5 }
 0x276   : > { %p1316_p1 = pnand %p1315_p11, %p1309_p0 }
 0x278   : > { %1319 = shalt.err (!%p1316_p1)
}
 0x279   : > { %s1320_s25 = scalar_lea.hbm %s823_s14, 32  ;;  %s1324_s11 = scalar_lea.hbm %s1678_s6, 128 }
 0x27a   : > { %p1321_p2 = scmp.ne.s32.totalorder %s823_s14, %s1320_s25  ;;  %p1325_p8 = scmp.lt.s32.totalorder %s823_s14, %s1678_s6 }
 0x27b   : > { %p1326_p3 = scmp.lt.s32.totalorder %s1324_s11, %s1320_s25 }
 0x27c   : > { %p1322_p4 = pnand %p1321_p2, %p1703_p9 }
 0x27d   : > { %p1327_p10 = por %p1326_p3, %p1325_p8 }
 0x27e   : > { %p1323_p6 = pneg %p1322_p4 }
 0x280   : > { %p1328_p12 = pnand %p1327_p10, %p1323_p6 }
 0x282   : > { %1331 = shalt.err (!%p1328_p12)
}
 0x283   : > { %1115 = dma.vmem_to_hbm [thread:$0]  (%p1703_p9), %s826_s15, 32, %s823_s14, %s796_s8  }
 0x284 PF: > { %p1141_p13 = scmp.ge.s32.totalorder %s1378_s24, 2  ;;  %s837_s0 = sand.u32 1, %s1366_s21  }
 0x285   : > { %p1704_p0 = scmp.ne.s32.totalorder %s1689_s28, 0  ;;  %s838_s1 = scalar_lea.sflag [#allocation4], %s837_s0 }
 0x287   : > { %p1130_p5 = pnand %p1141_p13, %p1704_p0 }
 0x289   : > { %p1131_p7 = pneg %p1130_p5 }
 0x28b   : > { %1357 = dma.done.wait (%p1131_p7), %s838_s1, 512  }
 0x28c   : > { %1359 = vsyncadd (%p1131_p7), %s838_s1, 4294966784  ;;  %s847_s18 = scalar_lea.sflag [#allocation10], %s837_s0 }
 0x28d   : > { %1361 = dma.done.wait (%p1131_p7), %s847_s18, 32  }
 0x28e   : > { %1363 = vsyncadd (%p1131_p7), %s847_s18, 4294967264  ;;  %p24_p9 = scmp.ge.s32.totalorder %s1501_s19, 6   ;;  %s1705_s21 = smov %s1370_s22 }
 0x28f   : > { %s1706_s22 = smov %s1374_s23  ;;  %s1707_s23 = smov %s1517_s7 }
 0x290   : > { %s1708_s24 = smov %s1501_s19  ;;  %26 = sbr.rel (!%p24_p9) target bundleno = 11 (0xb), region = 118 }
 0x295   :  { %852 = vsyncpa [#allocation3], 1 }
 0x296   :  { %854 = vsyncpa [#allocation3 + $0x1], 1 }
 0x297   :  { %855 = vsyncpa [#allocation6], 1 }
 0x298   :  { %856 = vsyncpa [#allocation4], 1 }
 0x299   :  { %858 = vsyncpa [#allocation4 + $0x1], 1 }
 0x29a   :  { %859 = vsyncpa [#allocation10], 1 }
 0x29b   :  { %861 = vsyncpa [#allocation10 + $0x1], 1 }

</bundles_post_ra>
